<compile_context>
chip_gen: v7x
topology: tpu7x:2x2x1
jax: 0.10.0
libtpu: 0.0.40
codegen_flags: <defaults>
</compile_context>

<pallas_src>
import jax
import jax.numpy as jnp
from jax import lax
from jax.experimental import pallas as pl
from jax.experimental.pallas import tpu as pltpu

EPS = 1e-5  # PyTorch BatchNorm1d default eps


def _projector_kernel(x_ref, w1_ref, g1_ref, b1_ref, w2_ref, g2_ref, o_ref,
                      h_buf, z_buf, sum1_ref, sumsq1_ref):
    phase = pl.program_id(0)
    i = pl.program_id(1)
    n_tiles = pl.num_programs(1)

    tm = x_ref.shape[0]            # batch rows per tile (static)
    n_total = h_buf.shape[0]       # true batch size (static)
    inv_n = jnp.float32(1.0 / n_total)
    row = pl.multiple_of(i * tm, tm)

    # ---- phase 0: h = X @ W1 (bf16 MXU, f32 accum); accumulate BN1 stats ----
    @pl.when(phase == 0)
    def _():
        @pl.when(i == 0)
        def _():
            sum1_ref[...] = jnp.zeros_like(sum1_ref)
            sumsq1_ref[...] = jnp.zeros_like(sumsq1_ref)

        h = jnp.dot(x_ref[...], w1_ref[...],
                    preferred_element_type=jnp.float32)
        h_buf[pl.ds(row, tm), :] = h
        sum1_ref[...] += jnp.sum(h, axis=0, keepdims=True)
        sumsq1_ref[...] += jnp.sum(h * h, axis=0, keepdims=True)

    # ---- phase 1: fused BN1 + ReLU + Linear2 per tile; BN2 + store at end ----
    @pl.when(phase == 1)
    def _():
        mean1 = sum1_ref[...] * inv_n
        var1 = sumsq1_ref[...] * inv_n - mean1 * mean1
        s1 = g1_ref[...] * lax.rsqrt(var1 + EPS)          # fused scale
        t1 = b1_ref[...] - mean1 * s1                     # fused shift

        h = h_buf[pl.ds(row, tm), :]
        hn = jnp.maximum(h * s1 + t1, 0.0).astype(w2_ref.dtype)
        z_buf[pl.ds(row, tm), :] = jnp.dot(hn, w2_ref[...],
                                           preferred_element_type=jnp.float32)

        @pl.when(i == n_tiles - 1)
        def _():
            z = z_buf[...]
            mean2 = jnp.mean(z, axis=0, keepdims=True)
            zc = z - mean2
            var2 = jnp.mean(zc * zc, axis=0, keepdims=True)
            s2 = g2_ref[...] * lax.rsqrt(var2 + EPS)
            o_ref[...] = (zc * s2).astype(o_ref.dtype)    # BN2 bias frozen at 0


def _pick_batch_tile(n):
    if n <= 512:
        return n
    for tm in (512, 384, 256, 128, 64, 32, 16, 8):
        if n % tm == 0:
            return tm
    return n


def simclr_projector(x, w1, gamma1, beta1, w2, gamma2, *, tm=None):
    """x: (N, input_dim). Returns (N, projection_dim) float32."""
    n, d_in = x.shape
    hidden = w1.shape[1]
    proj = w2.shape[1]

    if tm is None:
        tm = _pick_batch_tile(n)
    if n % tm != 0:
        # TODO(synk): mask padded rows out of the BN accumulators when N % tile != 0.
        tm = n
    assert tm == n or tm % 8 == 0, "batch tile must be a multiple of 8 or the full batch"
    n_tiles = n // tm

    # bf16 MXU operands, f32 accumulation; BN parameters stay f32.
    xb = x.astype(jnp.bfloat16)
    w1b = w1.astype(jnp.bfloat16)
    w2b = w2.astype(jnp.bfloat16)
    g1 = gamma1.reshape(1, hidden).astype(jnp.float32)
    b1 = beta1.reshape(1, hidden).astype(jnp.float32)
    g2 = gamma2.reshape(1, proj).astype(jnp.float32)

    resident = lambda shape: pl.BlockSpec(shape, lambda p, i: (0, 0))

    # VMEM budget for this tile plan (double-buffered X tile + resident weights
    # + resident h/z scratch + resident output), with headroom.
    need = (2 * tm * d_in * 2                             # X tile (bf16, 2 bufs)
            + 2 * (d_in * hidden + hidden * proj) * 2     # W1 + W2 (bf16)
            + n * hidden * 4 + n * proj * 4               # h_buf + z_buf (f32)
            + 2 * n * proj * 4                            # resident output
            + 8 * (hidden + proj) * 4)                    # BN vectors + accumulators
    vmem_limit = int(min(120 * 2**20, max(32 * 2**20, int(need * 1.5))))
    # TODO(synk): on v7x (64 MiB VMEM) with very large N*hidden, spill h to an
    # HBM scratch and re-read it in phase 1 instead of keeping it VMEM-resident.

    flops = 2 * n * (d_in * hidden + hidden * proj) + 8 * n * (hidden + proj)
    bytes_accessed = (xb.size * 2 * 2 + w1b.size * 2 + w2b.size * 2
                      + (g1.size + b1.size + g2.size) * 4 + n * proj * 4)

    return pl.pallas_call(
        _projector_kernel,
        out_shape=jax.ShapeDtypeStruct((n, proj), jnp.float32),
        grid=(2, n_tiles),
        in_specs=[
            # X advances with the batch tile in phase 0; pinned to tile 0 in phase 1.
            pl.BlockSpec((tm, d_in), lambda p, i: ((1 - p) * i, 0)),
            resident((d_in, hidden)),
            resident((1, hidden)),
            resident((1, hidden)),
            resident((hidden, proj)),
            resident((1, proj)),
        ],
        out_specs=resident((n, proj)),
        scratch_shapes=[
            pltpu.VMEM((n, hidden), jnp.float32),   # resident h
            pltpu.VMEM((n, proj), jnp.float32),     # resident z
            pltpu.VMEM((1, hidden), jnp.float32),   # BN1 column sum
            pltpu.VMEM((1, hidden), jnp.float32),   # BN1 column sum of squares
        ],
        compiler_params=pltpu.CompilerParams(
            dimension_semantics=("arbitrary", "arbitrary"),
            vmem_limit_bytes=vmem_limit),
        cost_estimate=pl.CostEstimate(flops=flops,
                                      transcendentals=2 * (hidden + proj),
                                      bytes_accessed=bytes_accessed),
    )(xb, w1b, g1, b1, w2b, g2)


def init_params(key, input_dim, hidden_dim, projection_dim):
    """Deterministic init matching nn.Linear's uniform bounds; weights stored (in, out)."""
    k1, k2 = jax.random.split(key)
    bound1 = 1.0 / jnp.sqrt(jnp.float32(input_dim))
    bound2 = 1.0 / jnp.sqrt(jnp.float32(hidden_dim))
    w1 = jax.random.uniform(k1, (input_dim, hidden_dim), jnp.float32,
                            minval=-bound1, maxval=bound1)
    w2 = jax.random.uniform(k2, (hidden_dim, projection_dim), jnp.float32,
                            minval=-bound2, maxval=bound2)
    gamma1 = jnp.ones((hidden_dim,), jnp.float32)
    beta1 = jnp.zeros((hidden_dim,), jnp.float32)
    gamma2 = jnp.ones((projection_dim,), jnp.float32)
    return w1, gamma1, beta1, w2, gamma2


def reference(x, w1, gamma1, beta1, w2, gamma2):
    """Training-mode forward (PyTorch semantics) with the same bf16 MXU operands."""
    h = jnp.dot(x.astype(jnp.bfloat16), w1.astype(jnp.bfloat16),
                preferred_element_type=jnp.float32)
    m1 = h.mean(0, keepdims=True)
    v1 = ((h - m1) ** 2).mean(0, keepdims=True)
    hn = jnp.maximum((h - m1) / jnp.sqrt(v1 + EPS) * gamma1 + beta1, 0.0)
    z = jnp.dot(hn.astype(jnp.bfloat16), w2.astype(jnp.bfloat16),
                preferred_element_type=jnp.float32)
    m2 = z.mean(0, keepdims=True)
    v2 = ((z - m2) ** 2).mean(0, keepdims=True)
    return (z - m2) / jnp.sqrt(v2 + EPS) * gamma2


if __name__ == "__main__":
    # Small shapes consistent with the module (projection_dim=128 default).
    batch, input_dim, hidden_dim, projection_dim = 16, 32, 64, 128

    key = jax.random.PRNGKey(0)
    kx, kp = jax.random.split(key)
    x = jax.random.normal(kx, (batch, input_dim), jnp.float32)
    params = init_params(kp, input_dim, hidden_dim, projection_dim)

    out = simclr_projector(x, *params, tm=8)   # 2 batch tiles -> exercises the grid
    out = jax.block_until_ready(out)

    ref = reference(x, *params)
    assert out.shape == (batch, projection_dim)
    err = float(jnp.max(jnp.abs(out - ref)))
    assert err < 1e-2, f"max abs err {err}"

    print("KERNEL_OK")
</pallas_src>

<mosaic_0001>
module attributes {stable_mosaic.version = 11 : i64} {
  func.func @_projector_kernel(%arg0: i32, %arg1: i32, %arg2: memref<8x32xbf16, #tpu.memory_space<vmem>>, %arg3: memref<32x64xbf16, #tpu.memory_space<vmem>>, %arg4: memref<1x64xf32, #tpu.memory_space<vmem>>, %arg5: memref<1x64xf32, #tpu.memory_space<vmem>>, %arg6: memref<64x128xbf16, #tpu.memory_space<vmem>>, %arg7: memref<1x128xf32, #tpu.memory_space<vmem>>, %arg8: memref<16x128xf32, #tpu.memory_space<vmem>>, %arg9: memref<16x64xf32, #tpu.memory_space<vmem>>, %arg10: memref<16x128xf32, #tpu.memory_space<vmem>>, %arg11: memref<1x64xf32, #tpu.memory_space<vmem>>, %arg12: memref<1x64xf32, #tpu.memory_space<vmem>>) attributes {dimension_semantics = [#tpu.dimension_semantics<arbitrary>, #tpu.dimension_semantics<arbitrary>], iteration_bounds = array<i64: 2, 2>, scalar_prefetch = 0 : i64, scratch_operands = 4 : i64, tpu.core_type = #tpu.core_type<tc>, window_params = [{transform_indices = @transform_0, window_bounds = array<i64: 8, 32>}, {pipeline_mode = #tpu.pipeline_mode<synchronous>, transform_indices = @transform_1, window_bounds = array<i64: 32, 64>}, {pipeline_mode = #tpu.pipeline_mode<synchronous>, transform_indices = @transform_2, window_bounds = array<i64: 1, 64>}, {pipeline_mode = #tpu.pipeline_mode<synchronous>, transform_indices = @transform_3, window_bounds = array<i64: 1, 64>}, {pipeline_mode = #tpu.pipeline_mode<synchronous>, transform_indices = @transform_4, window_bounds = array<i64: 64, 128>}, {pipeline_mode = #tpu.pipeline_mode<synchronous>, transform_indices = @transform_5, window_bounds = array<i64: 1, 128>}, {pipeline_mode = #tpu.pipeline_mode<synchronous>, transform_indices = @transform_6, window_bounds = array<i64: 16, 128>}]} {
    %c8_i32 = arith.constant 8 : i32
    %0 = arith.muli %arg1, %c8_i32 : i32
    %1 = tpu.assume_multiple %0, 8 : i32
    %c0_i32 = arith.constant 0 : i32
    %2 = arith.cmpi eq, %arg0, %c0_i32 : i32
    %3 = arith.extui %2 : i1 to i32
    %c0_i32_0 = arith.constant 0 : i32
    %4 = arith.cmpi ne, %3, %c0_i32_0 : i32
    scf.if %4 {
      %c0_i32_2 = arith.constant 0 : i32
      %8 = arith.cmpi eq, %arg1, %c0_i32_2 : i32
      %9 = arith.extui %8 : i1 to i32
      %c0_i32_3 = arith.constant 0 : i32
      %10 = arith.cmpi ne, %9, %c0_i32_3 : i32
      scf.if %10 {
        %cst_19 = arith.constant 0.000000e+00 : f32
        %27 = vector.broadcast %cst_19 : f32 to vector<1x64xf32>
        %c0_20 = arith.constant 0 : index
        %c0_21 = arith.constant 0 : index
        %28 = vector.load %arg11[%c0_20, %c0_21] : memref<1x64xf32, #tpu.memory_space<vmem>>, vector<1x64xf32>
        tpu.vector_store %arg11[%c0_20, %c0_21], %27 {strides = array<i32>} : memref<1x64xf32, #tpu.memory_space<vmem>>, vector<1x64xf32>,
        %cst_22 = arith.constant 0.000000e+00 : f32
        %29 = vector.broadcast %cst_22 : f32 to vector<1x64xf32>
        %c0_23 = arith.constant 0 : index
        %c0_24 = arith.constant 0 : index
        %30 = vector.load %arg12[%c0_23, %c0_24] : memref<1x64xf32, #tpu.memory_space<vmem>>, vector<1x64xf32>
        tpu.vector_store %arg12[%c0_23, %c0_24], %29 {strides = array<i32>} : memref<1x64xf32, #tpu.memory_space<vmem>>, vector<1x64xf32>,
      } else {
      }
      %c0 = arith.constant 0 : index
      %c0_4 = arith.constant 0 : index
      %11 = vector.load %arg2[%c0, %c0_4] : memref<8x32xbf16, #tpu.memory_space<vmem>>, vector<8x32xbf16>
      %c0_5 = arith.constant 0 : index
      %c0_6 = arith.constant 0 : index
      %12 = vector.load %arg3[%c0_5, %c0_6] : memref<32x64xbf16, #tpu.memory_space<vmem>>, vector<32x64xbf16>
      %cst_7 = arith.constant dense<0.000000e+00> : vector<8x64xf32>
      %13 = tpu.matmul %11, %12, %cst_7 {dimension_numbers = #tpu.dot_dimension_numbers<[1], [0], [0], [1], [0, 0, 1, 1], [], []>} : vector<8x32xbf16>, vector<32x64xbf16>, vector<8x64xf32> -> vector<8x64xf32>
      %14 = arith.index_cast %1 : i32 to index
      %c0_8 = arith.constant 0 : index
      %15 = vector.load %arg9[%14, %c0_8] : memref<16x64xf32, #tpu.memory_space<vmem>>, vector<8x64xf32>
      tpu.vector_store %arg9[%14, %c0_8], %13 {strides = array<i32>} : memref<16x64xf32, #tpu.memory_space<vmem>>, vector<8x64xf32>,
      %c0_9 = arith.constant 0 : index
      %c0_10 = arith.constant 0 : index
      %16 = vector.load %arg11[%c0_9, %c0_10] : memref<1x64xf32, #tpu.memory_space<vmem>>, vector<1x64xf32>
      %cst_11 = arith.constant dense<0.000000e+00> : vector<64xf32>
      %17 = vector.multi_reduction <add>, %13, %cst_11 [0] : vector<8x64xf32> to vector<64xf32>
      %18 = vector.shape_cast %17 : vector<64xf32> to vector<1x64xf32>
      %19 = arith.addf %16, %18 : vector<1x64xf32>
      %c0_12 = arith.constant 0 : index
      %c0_13 = arith.constant 0 : index
      %20 = vector.load %arg11[%c0_12, %c0_13] : memref<1x64xf32, #tpu.memory_space<vmem>>, vector<1x64xf32>
      tpu.vector_store %arg11[%c0_12, %c0_13], %19 {strides = array<i32>} : memref<1x64xf32, #tpu.memory_space<vmem>>, vector<1x64xf32>,
      %c0_14 = arith.constant 0 : index
      %c0_15 = arith.constant 0 : index
      %21 = vector.load %arg12[%c0_14, %c0_15] : memref<1x64xf32, #tpu.memory_space<vmem>>, vector<1x64xf32>
      %22 = arith.mulf %13, %13 : vector<8x64xf32>
      %cst_16 = arith.constant dense<0.000000e+00> : vector<64xf32>
      %23 = vector.multi_reduction <add>, %22, %cst_16 [0] : vector<8x64xf32> to vector<64xf32>
      %24 = vector.shape_cast %23 : vector<64xf32> to vector<1x64xf32>
      %25 = arith.addf %21, %24 : vector<1x64xf32>
      %c0_17 = arith.constant 0 : index
      %c0_18 = arith.constant 0 : index
      %26 = vector.load %arg12[%c0_17, %c0_18] : memref<1x64xf32, #tpu.memory_space<vmem>>, vector<1x64xf32>
      tpu.vector_store %arg12[%c0_17, %c0_18], %25 {strides = array<i32>} : memref<1x64xf32, #tpu.memory_space<vmem>>, vector<1x64xf32>,
    } else {
    }
    %c1_i32 = arith.constant 1 : i32
    %5 = arith.cmpi eq, %arg0, %c1_i32 : i32
    %6 = arith.extui %5 : i1 to i32
    %cst = arith.constant 6.250000e-02 : f32
    %c0_i32_1 = arith.constant 0 : i32
    %7 = arith.cmpi ne, %6, %c0_i32_1 : i32
    scf.if %7 {
      %c0 = arith.constant 0 : index
      %c0_2 = arith.constant 0 : index
      %8 = vector.load %arg11[%c0, %c0_2] : memref<1x64xf32, #tpu.memory_space<vmem>>, vector<1x64xf32>
      %9 = vector.broadcast %cst : f32 to vector<1x64xf32>
      %10 = arith.mulf %8, %9 : vector<1x64xf32>
      %c0_3 = arith.constant 0 : index
      %c0_4 = arith.constant 0 : index
      %11 = vector.load %arg12[%c0_3, %c0_4] : memref<1x64xf32, #tpu.memory_space<vmem>>, vector<1x64xf32>
      %12 = vector.broadcast %cst : f32 to vector<1x64xf32>
      %13 = arith.mulf %11, %12 : vector<1x64xf32>
      %14 = arith.mulf %10, %10 : vector<1x64xf32>
      %15 = arith.subf %13, %14 : vector<1x64xf32>
      %c0_5 = arith.constant 0 : index
      %c0_6 = arith.constant 0 : index
      %16 = vector.load %arg4[%c0_5, %c0_6] : memref<1x64xf32, #tpu.memory_space<vmem>>, vector<1x64xf32>
      %cst_7 = arith.constant 9.99999974E-6 : f32
      %17 = vector.broadcast %cst_7 : f32 to vector<1x64xf32>
      %18 = arith.addf %15, %17 : vector<1x64xf32>
      %19 = math.rsqrt %18 : vector<1x64xf32>
      %20 = arith.mulf %16, %19 : vector<1x64xf32>
      %c0_8 = arith.constant 0 : index
      %c0_9 = arith.constant 0 : index
      %21 = vector.load %arg5[%c0_8, %c0_9] : memref<1x64xf32, #tpu.memory_space<vmem>>, vector<1x64xf32>
      %22 = arith.mulf %10, %20 : vector<1x64xf32>
      %23 = arith.subf %21, %22 : vector<1x64xf32>
      %24 = arith.index_cast %1 : i32 to index
      %c0_10 = arith.constant 0 : index
      %25 = vector.load %arg9[%24, %c0_10] : memref<16x64xf32, #tpu.memory_space<vmem>>, vector<8x64xf32>
      %26 = vector.broadcast %20 : vector<1x64xf32> to vector<8x64xf32>
      %27 = arith.mulf %25, %26 : vector<8x64xf32>
      %28 = vector.broadcast %23 : vector<1x64xf32> to vector<8x64xf32>
      %29 = arith.addf %27, %28 : vector<8x64xf32>
      %cst_11 = arith.constant 0.000000e+00 : f32
      %30 = vector.broadcast %cst_11 : f32 to vector<8x64xf32>
      %31 = arith.maximumf %29, %30 : vector<8x64xf32>
      %32 = arith.truncf %31 : vector<8x64xf32> to vector<8x64xbf16>
      %c0_12 = arith.constant 0 : index
      %c0_13 = arith.constant 0 : index
      %33 = vector.load %arg6[%c0_12, %c0_13] : memref<64x128xbf16, #tpu.memory_space<vmem>>, vector<64x128xbf16>
      %cst_14 = arith.constant dense<0.000000e+00> : vector<8x128xf32>
      %34 = tpu.matmul %32, %33, %cst_14 {dimension_numbers = #tpu.dot_dimension_numbers<[1], [0], [0], [1], [0, 0, 1, 1], [], []>} : vector<8x64xbf16>, vector<64x128xbf16>, vector<8x128xf32> -> vector<8x128xf32>
      %35 = arith.index_cast %1 : i32 to index
      %c0_15 = arith.constant 0 : index
      %36 = vector.load %arg10[%35, %c0_15] : memref<16x128xf32, #tpu.memory_space<vmem>>, vector<8x128xf32>
      tpu.vector_store %arg10[%35, %c0_15], %34 {strides = array<i32>} : memref<16x128xf32, #tpu.memory_space<vmem>>, vector<8x128xf32>,
      %c1_i32_16 = arith.constant 1 : i32
      %37 = arith.cmpi eq, %arg1, %c1_i32_16 : i32
      %38 = arith.extui %37 : i1 to i32
      %c0_i32_17 = arith.constant 0 : i32
      %39 = arith.cmpi ne, %38, %c0_i32_17 : i32
      scf.if %39 {
        %c0_18 = arith.constant 0 : index
        %c0_19 = arith.constant 0 : index
        %40 = vector.load %arg10[%c0_18, %c0_19] : memref<16x128xf32, #tpu.memory_space<vmem>>, vector<16x128xf32>
        %cst_20 = arith.constant dense<0.000000e+00> : vector<128xf32>
        %41 = vector.multi_reduction <add>, %40, %cst_20 [0] : vector<16x128xf32> to vector<128xf32>
        %42 = vector.shape_cast %41 : vector<128xf32> to vector<1x128xf32>
        %cst_21 = arith.constant 1.600000e+01 : f32
        %43 = vector.broadcast %cst_21 : f32 to vector<1x128xf32>
        %44 = arith.divf %42, %43 : vector<1x128xf32>
        %45 = vector.broadcast %44 : vector<1x128xf32> to vector<16x128xf32>
        %46 = arith.subf %40, %45 : vector<16x128xf32>
        %47 = arith.mulf %46, %46 : vector<16x128xf32>
        %cst_22 = arith.constant dense<0.000000e+00> : vector<128xf32>
        %48 = vector.multi_reduction <add>, %47, %cst_22 [0] : vector<16x128xf32> to vector<128xf32>
        %49 = vector.shape_cast %48 : vector<128xf32> to vector<1x128xf32>
        %cst_23 = arith.constant 1.600000e+01 : f32
        %50 = vector.broadcast %cst_23 : f32 to vector<1x128xf32>
        %51 = arith.divf %49, %50 : vector<1x128xf32>
        %c0_24 = arith.constant 0 : index
        %c0_25 = arith.constant 0 : index
        %52 = vector.load %arg7[%c0_24, %c0_25] : memref<1x128xf32, #tpu.memory_space<vmem>>, vector<1x128xf32>
        %cst_26 = arith.constant 9.99999974E-6 : f32
        %53 = vector.broadcast %cst_26 : f32 to vector<1x128xf32>
        %54 = arith.addf %51, %53 : vector<1x128xf32>
        %55 = math.rsqrt %54 : vector<1x128xf32>
        %56 = arith.mulf %52, %55 : vector<1x128xf32>
        %57 = vector.broadcast %56 : vector<1x128xf32> to vector<16x128xf32>
        %58 = arith.mulf %46, %57 : vector<16x128xf32>
        %c0_27 = arith.constant 0 : index
        %c0_28 = arith.constant 0 : index
        %59 = vector.load %arg8[%c0_27, %c0_28] : memref<16x128xf32, #tpu.memory_space<vmem>>, vector<16x128xf32>
        tpu.vector_store %arg8[%c0_27, %c0_28], %58 {strides = array<i32>} : memref<16x128xf32, #tpu.memory_space<vmem>>, vector<16x128xf32>,
      } else {
      }
    } else {
    }
    return
  }
  func.func @transform_0(%arg0: i32, %arg1: i32) -> (i32, i32) {
    %c1_i32 = arith.constant 1 : i32
    %0 = arith.subi %c1_i32, %arg0 : i32
    %1 = arith.muli %0, %arg1 : i32
    %c0_i32 = arith.constant 0 : i32
    %c0_i32_0 = arith.constant 0 : i32
    return %1, %c0_i32 : i32, i32
  }
  func.func @transform_1(%arg0: i32, %arg1: i32) -> (i32, i32) {
    %c0_i32 = arith.constant 0 : i32
    %c0_i32_0 = arith.constant 0 : i32
    %c0_i32_1 = arith.constant 0 : i32
    return %c0_i32, %c0_i32_0 : i32, i32
  }
  func.func @transform_2(%arg0: i32, %arg1: i32) -> (i32, i32) {
    %c0_i32 = arith.constant 0 : i32
    %c0_i32_0 = arith.constant 0 : i32
    %c0_i32_1 = arith.constant 0 : i32
    return %c0_i32, %c0_i32_0 : i32, i32
  }
  func.func @transform_3(%arg0: i32, %arg1: i32) -> (i32, i32) {
    %c0_i32 = arith.constant 0 : i32
    %c0_i32_0 = arith.constant 0 : i32
    %c0_i32_1 = arith.constant 0 : i32
    return %c0_i32, %c0_i32_0 : i32, i32
  }
  func.func @transform_4(%arg0: i32, %arg1: i32) -> (i32, i32) {
    %c0_i32 = arith.constant 0 : i32
    %c0_i32_0 = arith.constant 0 : i32
    %c0_i32_1 = arith.constant 0 : i32
    return %c0_i32, %c0_i32_0 : i32, i32
  }
  func.func @transform_5(%arg0: i32, %arg1: i32) -> (i32, i32) {
    %c0_i32 = arith.constant 0 : i32
    %c0_i32_0 = arith.constant 0 : i32
    %c0_i32_1 = arith.constant 0 : i32
    return %c0_i32, %c0_i32_0 : i32, i32
  }
  func.func @transform_6(%arg0: i32, %arg1: i32) -> (i32, i32) {
    %c0_i32 = arith.constant 0 : i32
    %c0_i32_0 = arith.constant 0 : i32
    %c0_i32_1 = arith.constant 0 : i32
    return %c0_i32, %c0_i32_0 : i32, i32
  }
}

</mosaic_0001>

<bundles_post_ra>
// kernel: tpu_custom_call.1
= control target key start
LH: loop header
LB: loop body
LE: loop exit
PB: predicated region body
PF: predicated region fallthrough
CT: control target
= control target key end

     0   :  { %s1318_s0 = inlined_call_operand.hbm [shape: bf16[16,32], index: 0, kind: input, shape index: {}]   ;;  %s1319_s1 = inlined_call_operand.hbm [shape: bf16[32,64], index: 1, kind: input, shape index: {}]   ;;  %s1320_s2 = inlined_call_operand.vmem [shape: f32[1,64], index: 2, kind: input, shape index: {}]   ;;  %s1321_s3 = inlined_call_operand.vmem [shape: f32[1,64], index: 3, kind: input, shape index: {}]   ;;  %s1322_s4 = inlined_call_operand.hbm [shape: bf16[64,128], index: 4, kind: input, shape index: {}]   ;;  %s1323_s5 = inlined_call_operand.vmem [shape: f32[1,128], index: 5, kind: input, shape index: {}]   ;;  %s1324_s6 = inlined_call_operand.hbm [shape: f32[16,128], index: 6, kind: output, shape index: {}]  }
   0x1   :  { %1330 = sst [smem:[#allocation16_spill]] %s1319_s1 }
   0x2   :  { %1331 = sst [smem:[#allocation17_spill]] %s1322_s4 }
   0x3   :  { %11 = vsyncpa [#allocation7], 0 }
   0x4   :  { %13 = vsyncpa [#allocation7 + $0x1], 0 }
   0x5   :  { %14 = vsyncpa [#allocation10], 0 }
   0x6   :  { %15 = vsyncpa [#allocation8], 0  ;;  %s1063_s21 = smov 0   ;;  %s1065_s22 = smov 0  }
   0x7   :  { %s1067_s23 = smov 0   ;;  %s1069_s24 = smov 0  }
   0x8   :  { %s1071_s25 = smov 0   ;;  %s1073_s26 = smov 0  }
   0x9   :  { %s1075_s27 = smov 0   ;;  %s1077_s28 = smov 0  }
   0xa LB: > { %s1329_s29 = sadd.s32 4294967295, %s1013_s28   ;;  %p57_p0 = scmp.ne.s32.totalorder %s989_s22, %s985_s21  ;;  %s1013_s28 = sphi %s1077_s28, %s21_s28   ;;  %s1009_s27 = sphi %s1075_s27, %s1350_s27   ;;  %s1005_s26 = sphi %s1073_s26, %s1349_s26   ;;  %s1001_s25 = sphi %s1071_s25, %s1348_s25   ;;  %s997_s24 = sphi %s1069_s24, %s1347_s24   ;;  %s993_s23 = sphi %s1067_s23, %s1346_s23   ;;  %s989_s22 = sphi %s1065_s22, %s1345_s22   ;;  %s985_s21 = sphi %s1063_s21, %s1344_s21  }
   0xb   : > { %p1105_p1 = scmp.eq.s32.totalorder %s1329_s29, 0  ;;  %p654_p2 = scmp.ge.s32.totalorder %s1013_s28, 1 }
   0xc   : > { %p194_p3 = scmp.lt.s32.totalorder %s1013_s28, 5  ;;  %s1015_s9 = smov [#allocation9]  }
   0xd   : > { %s1332_s30 = scalar_select %p1105_p1, 1, 0 }
   0xe   : > { %p1113_p4 = por %p1105_p1, %p57_p0  ;;  %p1117_p5 = pnand %p654_p2, %p194_p3 }
   0xf   : > { %s206_s10 = sshll.u32 %s1015_s9, 4  ;;  %s1016_s12 = smov [#allocation11]   ;;  %s207_s10 = int_to_ptr.vmem [resolvable:$true] %s206_s10 }
  0x10   : > { %s1333_s7 = scalar_select %p1113_p4, 1, 0 }
  0x11   : > { %s1334_s8 = scalar_select %p1117_p5, 1, 0 }
  0x12   : > { %p723_p6 = pneg %p1117_p5  ;;  %s225_s13 = sshll.u32 %s1016_s12, 4  ;;  %s1129_s13 = int_to_ptr.vmem [resolvable:$true] %s225_s13 }
  0x13   : > { %s1336_s1 = sld [smem:[#allocation16_spill]] }
  0x14   : > { %p1125_p7 = pnand %p723_p6, %p1105_p1 }
  0x16   : > { %p829_p9 = pneg %p1125_p7 }
  0x19   : > { %s827_s16 = scalar_lea.hbm %s1336_s1, 256 }
  0x1a   : > { %p828_p8 = scmp.ne.s32.totalorder %s1336_s1, %s827_s16  ;;  %p834_p12 = scmp.lt.u32.totalorder %s827_s16, %s1336_s1 }
  0x1c   : > { %p830_p10 = pnand %p829_p9, %p828_p8 }
  0x1e   : > { %p831_p11 = pneg %p830_p10 }
  0x20   : > { %p836_p13 = pnand %p834_p12, %p831_p11 }
  0x22   : > { %839 = shalt.err (!%p836_p13)
}
  0x23   : > { %s840_s21 = scalar_lea.vmem %s207_s10, 256  ;;  %p848_p6 = scmp.lt.s32.totalorder %s207_s10, %s207_s10 }
  0x24   : > { %p841_p0 = scmp.ne.s32.totalorder %s207_s10, %s840_s21  ;;  %p849_p1 = scmp.lt.s32.totalorder %s840_s21, %s840_s21 }
  0x26   : > { %p843_p2 = pnand %p841_p0, %p829_p9  ;;  %p850_p4 = por %p849_p1, %p848_p6 }
  0x28   : > { %p844_p3 = pneg %p843_p2 }
  0x2a   : > { %p851_p5 = pnand %p850_p4, %p844_p3 }
  0x2c   : > { %854 = shalt.err (!%p851_p5)
}
  0x2d   : > { %s1017_s9 = smov 64   ;;  %s1018_s12 = smov 4  }
  0x2e   : > { %726 = dma.hbm_to_vmem [thread:$0]  (!%p1125_p7), %s1336_s1, 256, %s207_s10, [#allocation10], %s1017_s9, %s1017_s9, %s1018_s12  }
  0x2f   : > { %s1337_s4 = sld [smem:[#allocation17_spill]] }
  0x35   : > { %s855_s18 = scalar_lea.hbm %s1337_s4, 512 }
  0x36   : > { %p856_p8 = scmp.ne.s32.totalorder %s1337_s4, %s855_s18  ;;  %p862_p5 = scmp.lt.u32.totalorder %s855_s18, %s1337_s4 }
  0x38   : > { %p858_p1 = pnand %p856_p8, %p829_p9 }
  0x3a   : > { %p859_p4 = pneg %p858_p1 }
  0x3c   : > { %p864_p10 = pnand %p862_p5, %p859_p4 }
  0x3e   : > { %867 = shalt.err (!%p864_p10)
}
  0x3f   : > { %s868_s10 = scalar_lea.vmem %s1129_s13, 512  ;;  %p876_p0 = scmp.lt.s32.totalorder %s1129_s13, %s1129_s13 }
  0x40   : > { %p869_p11 = scmp.ne.s32.totalorder %s1129_s13, %s868_s10  ;;  %p877_p2 = scmp.lt.s32.totalorder %s868_s10, %s868_s10 }
  0x42   : > { %p871_p12 = pnand %p869_p11, %p829_p9  ;;  %p878_p3 = por %p877_p2, %p876_p0 }
  0x44   : > { %p872_p13 = pneg %p871_p12 }
  0x46   : > { %p879_p6 = pnand %p878_p3, %p872_p13 }
  0x48   : > { %882 = shalt.err (!%p879_p6)
}
  0x49   : > { %729 = dma.hbm_to_vmem [thread:$0]  (!%p1125_p7), %s1337_s4, 512, %s1129_s13, [#allocation10], %s1017_s9, %s1017_s9, %s1018_s12  }
  0x4a   : > { %s30_s15 = sadd.s32 1, %s1005_s26  ;;  %s33_s16 = sadd.s32 1, %s1009_s27 }
  0x4b   : > { %p31_p9 = scmp.ge.s32.totalorder %s30_s15, 2  ;;  %s37_s11 = ssub.s32 1, %s1009_s27 }
  0x4c   : > { %p51_p8 = scmp.ne.s32.totalorder %s993_s23, %s989_s22  ;;  %p52_p1 = scmp.eq.s32.totalorder %s1013_s28, 0 }
  0x4d   : > { %s1352_s15 = smov (%p31_p9, %s30_s15), 0  ;;  %s1354_s16 = smov (!%p31_p9, %s33_s16), %s1009_s27 }
  0x4e   : > { %p35_p4 = scmp.ge.s32.totalorder %s1354_s16, 2  ;;  %s38_s17 = smul.u32 %s1005_s26, %s37_s11 }
  0x4f   : > { %p736_p5 = scmp.lt.s32.totalorder %s1013_s28, 4  ;;  %s242_s18 = sand.u32 1, %s993_s23  }
  0x50   : > { %s1356_s16 = smov (%p35_p4, %s1354_s16), 0  ;;  %p53_p7 = por %p52_p1, %p51_p8 }
  0x51   : > { %s658_s13 = sshll.u32 %s242_s18, 2  ;;  %s39_s9 = ssub.s32 1, %s1356_s16 }
  0x52   : > { %s40_s12 = smul.u32 %s39_s9, %s1352_s15  ;;  %s44_s19 = sadd.s32 1, %s993_s23 }
  0x53   : > { %s659_s20 = sshll.u32 %s38_s17, 6  ;;  %s246_s21 = scalar_lea.vmem [#allocation6], %s658_s13 }
  0x54   : > { %s255_s10 = sshll.u32 %s246_s21, 4  ;;  %s41_s29 = ssub.s32 %s38_s17, %s40_s12  ;;  %s1206_s10 = int_to_ptr.vmem [resolvable:$true] %s255_s10 }
  0x55   : > { %p42_p10 = scmp.eq.s32.totalorder %s41_s29, 0  ;;  %p1197_p11 = pnand %p736_p5, %p53_p7 }
  0x56   : > { %s1204_s4 = scalar_lea.hbm %s1318_s0, %s659_s20  ;;  %s243_s13 = scalar_lea.sflag [#allocation7], %s242_s18 }
  0x57   : > { %s1209_s17 = scalar_select %p42_p10, %s993_s23, %s44_s19  }
  0x58   : > { %s883_s9 = scalar_lea.hbm %s1204_s4, 64  ;;  %p885_p13 = pneg %p1197_p11 }
  0x59   : > { %p884_p12 = scmp.ne.s32.totalorder %s1204_s4, %s883_s9  ;;  %s888_s20 = scalar_lea.hbm %s1318_s0, 128 }
  0x5a   : > { %p889_p3 = scmp.lt.u32.totalorder %s1204_s4, %s1318_s0  ;;  %p890_p6 = scmp.lt.u32.totalorder %s888_s20, %s883_s9 }
  0x5b   : > { %p886_p0 = pnand %p885_p13, %p884_p12  ;;  %p892_p8 = scmp.lt.u32.totalorder %s883_s9, %s1204_s4 }
  0x5c   : > { %p891_p9 = por %p890_p6, %p889_p3 }
  0x5d   : > { %p887_p2 = pneg %p886_p0 }
  0x5e   : > { %p893_p1 = por %p892_p8, %p891_p9 }
  0x60   : > { %p894_p4 = pnand %p893_p1, %p887_p2 }
  0x62   : > { %897 = shalt.err (!%p894_p4)
}
  0x63   : > { %s898_s18 = scalar_lea.vmem %s1206_s10, 64  ;;  %s1019_s19 = smov [#allocation6]  }
  0x64   : > { %p899_p5 = scmp.ne.s32.totalorder %s1206_s10, %s898_s18  ;;  %s903_s11 = sshll.u32 %s1019_s19, 4  ;;  %s904_s11 = int_to_ptr.vmem [resolvable:$false] %s903_s11 }
  0x65   : > { %s905_s1 = scalar_lea.vmem %s904_s11, 128  ;;  %p906_p12 = scmp.lt.s32.totalorder %s1206_s10, %s904_s11 }
  0x66   : > { %p901_p7 = pnand %p899_p5, %p885_p13  ;;  %p907_p0 = scmp.lt.s32.totalorder %s905_s1, %s898_s18 }
  0x68   : > { %p902_p10 = pneg %p901_p7  ;;  %p908_p3 = por %p907_p0, %p906_p12 }
  0x6a   : > { %p909_p6 = pnand %p908_p3, %p902_p10 }
  0x6c   : > { %912 = shalt.err (!%p909_p6)
}
  0x6d   : > { %733 = dma.hbm_to_vmem [thread:$0]  (!%p1197_p11), %s1204_s4, 64, %s1206_s10, %s243_s13  }
  0x6e   : > { %p1339_p2 = scmp.ne.s32.totalorder %s1334_s8, 0 }
  0x6f   : > { %s266_s9 = sand.u32 (!%p1339_p2), 1, %s989_s22   ;;  %p1340_p13 = scmp.ne.s32.totalorder (!%p1339_p2), %s1333_s7, 0 }
  0x70   : > { %264 = sbr.rel (%p1339_p2) target bundleno = 718 (0x2ce), region = 44  ;;  %s661_s12 = sshll.u32 (!%p1339_p2), %s266_s9, 2 }
  0x71   : > { %s267_s20 = scalar_lea.sflag (!%p1339_p2), [#allocation7], %s266_s9  ;;  %s270_s21 = scalar_lea.vmem (!%p1339_p2), [#allocation6], %s661_s12 }
  0x77   : > { %972 = dma.done.wait (%p1340_p13), %s267_s20, 64  }
  0x78   : > { %974 = vsyncadd (%p1340_p13), %s267_s20, 4294967232  ;;  %p1341_p9 = scmp.ne.s32.totalorder %s1332_s30, 0 }
  0x7a   : > { %976 = dma.done.wait (%p1341_p9), [#allocation10], 768  }
  0x7b   : > { %978 = vsyncadd (%p1341_p9), [#allocation10], 4294966528  ;;  %s1248_s4 = sshll.u32 %s997_s24, 3  ;;  %p665_p11 = scmp.ne.s32.totalorder %s1001_s25, 0 }
  0x7c   : > { %p666_p8 = scmp.ne.s32.totalorder (!%p665_p11), %s997_s24, 0 }
  0x7d   : > { %309 = sbr.rel (%p665_p11) target bundleno = 378 (0x17a), region = 60 }
  0x84   : > { %313 = sbr.rel (%p666_p8) target bundleno = 139 (0x8b), region = 64  ;;  %vm314_vm0 = vcmask (!%p666_p8), 516096   ;;  %v1020_v0 = vmov (!%p666_p8), 0.0  }
  0x85   : > { %315 = vst.msk [vmem:[#allocation4] sm:$0x1] (!%p666_p8), %vm314_vm0, %v1020_v0  ;;  %316 = vst.msk [vmem:[#allocation5] sm:$0x1] (!%p666_p8), %vm314_vm0, %v1020_v0 }
  0x8b PF: > { %v817_v1 = vld [vmem:[#allocation9] sm:$0xff]   ;;  %v1021_v2 = vmov 0.0   ;;  %v818_v3 = vld [vmem:[#allocation9 + $0x8] sm:$0xff]   ;;  %vm1022_vm1 = vmmov 0   ;;  %v317_v4 = vld [vmem:[%s270_s21] sm:$0xf] }
  0x8c   : > { %689 = vmatprep.subr.bf16.mxu0 %v1021_v2  ;;  %693 = vmatprep.mubr.msk.bf16.mxu0 %vm1022_vm1, %v1021_v2  ;;  %vm334_vm2 = vcmask 261120   ;;  %vm379_vm3 = vcmask 523264   ;;  %s378_s30 = scalar_lea.vmem [#allocation2], %s1248_s4  ;;  %v381_v21 = vld [vmem:[#allocation4] sm:$0x1]  ;;  %vm390_vm4 = vcmask 516096  }
  0x8d   : > { %690 = vmatpush3.bf16.msra.mxu0 %v817_v1  ;;  %v392_v24 = vld [vmem:[#allocation5] sm:$0x1] }
  0x8e   : > { %691 = vmatprep.subr.bf16.mxu0 %v1021_v2 }
  0x91   : > { %692 = vmatpush3.bf16.msra.mxu0 %v818_v3 }
  0x94   : > { %694 = vmatmul.mubr.msk.bf16.vlgmr.msra.gmra.mrb[0].mxu0 %vm334_vm2, %v317_v4 }
 0x167   : > { %v372_v5 = vpop.f32.mrb[0].mxu0 }
 0x168   : > { %380 = vst.msk [vmem:[%s378_s30] sm:$0xff] %vm379_vm3, %v372_v5  ;;  %v382_v6 = vsel %vm379_vm3, %v372_v5, 0.0  ;;  %v393_v7 = vmul.f32 %v372_v5, %v372_v5  ;;  %v695_v8 = vpop.f32.mrb[1].mxu0 }
 0x169   : > { %v383_v9 = vrot.slane %v382_v6, 4  ;;  %v375_v10 = vpop.f32.mrb[2].mxu0 }
 0x16a   : > { %v394_v11 = vsel %vm379_vm3, %v393_v7, 0.0  ;;  %v696_v12 = vpop.f32.mrb[3].mxu0 }
 0x16b   : > { %v384_v13 = vadd.f32 %v383_v9, %v382_v6  ;;  %v395_v14 = vrot.slane %v394_v11, 4 }
 0x16d   : > { %v385_v15 = vrot.slane %v384_v13, 2  ;;  %v396_v16 = vadd.f32 %v395_v14, %v394_v11 }
 0x16f   : > { %v386_v17 = vadd.f32 %v385_v15, %v384_v13  ;;  %v397_v18 = vrot.slane %v396_v16, 2 }
 0x171   : > { %v387_v19 = vrot.slane %v386_v17, 1  ;;  %v398_v20 = vadd.f32 %v397_v18, %v396_v16 }
 0x173   : > { %v388_v22 = vadd.f32 %v387_v19, %v386_v17  ;;  %v399_v23 = vrot.slane %v398_v20, 1 }
 0x175   : > { %v389_v25 = vadd.f32 %v388_v22, %v381_v21  ;;  %v400_v26 = vadd.f32 %v399_v23, %v398_v20 }
 0x177   : > { %391 = vst.msk [vmem:[#allocation4] sm:$0x1] %vm390_vm4, %v389_v25  ;;  %v401_v27 = vadd.f32 %v400_v26, %v392_v24 }
 0x179   : > { %402 = vst.msk [vmem:[#allocation5] sm:$0x1] %vm390_vm4, %v401_v27 }
 0x17a PF: > { %p670_p1 = scmp.ne.s32.totalorder %s1001_s25, 1 }
 0x17b   : > { %v819_v28 = vld [vmem:[#allocation11] sm:$0xff] (!%p670_p1)   ;;  %v1023_v29 = vmov (!%p670_p1), 0.0   ;;  %v820_v30 = vld [vmem:[#allocation11 + $0x8] sm:$0xff] (!%p670_p1)   ;;  %vm1024_vm5 = vmmov (!%p670_p1), 0   ;;  %v821_v35 = vld [vmem:[#allocation11 + $0x10] sm:$0xff] (!%p670_p1)   ;;  %v423_v40 = vlaneseq (!%p670_p1)  ;;  %s420_s14 = scalar_lea.vmem (!%p670_p1), [#allocation2], %s1248_s4 }
 0x17c   : > { %406 = sbr.rel (%p670_p1) target bundleno = 692 (0x2b4), region = 68  ;;  %697 = vmatprep.subr.bf16.mxu0 (!%p670_p1), %v1023_v29  ;;  %705 = vmatprep.mubr.msk.bf16.mxu0 (!%p670_p1), %vm1024_vm5, %v1023_v29  ;;  %v822_v38 = vld [vmem:[#allocation11 + $0x18] sm:$0xff] (!%p670_p1)   ;;  %v413_v42 = vld [vmem:[%s1320_s2] sm:$0x1] (!%p670_p1)  ;;  %vm470_vm6 = vcmask (!%p670_p1), 523264   ;;  %s514_s13 = scalar_lea.vmem (!%p670_p1), [#allocation3], %s1248_s4 }
 0x17d   : > { %698 = vmatpush3.bf16.msra.mxu0 (!%p670_p1), %v819_v28  ;;  %v424_v41 = vshrl.u32 (!%p670_p1), %v423_v40, 7  ;;  %v417_v46 = vld [vmem:[%s1321_s3] sm:$0x1] (!%p670_p1)  ;;  %p676_p4 = scmp.ne.s32.totalorder (!%p670_p1), %s997_s24, 1 }
 0x17e   : > { %699 = vmatprep.subr.bf16.mxu0 (!%p670_p1), %v1023_v29  ;;  %v407_v31 = vld [vmem:[#allocation4] sm:$0x1] (!%p670_p1) }
 0x17f   : > { %v408_v33 = vmul.f32 (!%p670_p1), 0.0625, %v407_v31  ;;  %v425_v43 = vsub.s32 (!%p670_p1), 0, %v424_v41  ;;  %v421_v47 = vld [vmem:[%s420_s14] sm:$0xff] (!%p670_p1) }
 0x180   : > { %v409_v32 = vld [vmem:[#allocation5] sm:$0x1] (!%p670_p1) }
 0x181   : > { %v410_v34 = vmul.f32 (!%p670_p1), 0.0625, %v409_v32  ;;  %700 = vmatpush3.bf16.msra.mxu0 (!%p670_p1), %v820_v30  ;;  %v411_v36 = vmul.f32 (!%p670_p1), %v408_v33, %v408_v33 }
 0x182   : > { %701 = vmatprep.subr.bf16.mxu0 (!%p670_p1), %v1023_v29 }
 0x183   : > { %v412_v37 = vsub.f32 %v410_v34, %v411_v36  ;;  %v543_v19 = vld [vmem:[%s1323_s5] sm:$0x1] (!%p676_p4) }
 0x185   : > { %702 = vmatpush3.bf16.msra.mxu0 %v821_v35  ;;  %v414_v39 = vadd.f32 1e-05, %v412_v37 }
 0x186   : > { %703 = vmatprep.subr.bf16.mxu0 %v1023_v29 }
 0x187   : > { %823 = vrsqrt.f32 %v414_v39 }
 0x189   : > { %704 = vmatpush3.bf16.msra.mxu0 %v822_v38 }
 0x191   : > { %v824_v44 = vpop.eup %823 }
 0x192   : > { %v416_v45 = vmul.f32 %v824_v44, %v413_v42 }
 0x194   : > { %v418_v48 = vmul.f32 %v416_v45, %v408_v33  ;;  %v426_v49 = vrot.slane %v416_v45, %v425_v43 }
 0x196   : > { %v419_v50 = vsub.f32 %v417_v46, %v418_v48  ;;  %v428_v51 = vmul.f32 %v426_v49, %v421_v47 }
 0x198   : > { %v433_v52 = vrot.slane %v419_v50, %v425_v43 }
 0x19a   : > { %v435_v53 = vadd.f32 %v433_v52, %v428_v51 }
 0x19c   : > { %v436_v54 = vmax.f32 %v435_v53, 0.0 }
 0x19e   : > { %v437_v55 = vpack.c.bf16 %v436_v54, %v436_v54 }
 0x1a0   : > { %706 = vmatmul.mubr.msk.bf16.vlgmr.msra.gmra.mrb[0].mxu0 %vm470_vm6, %v437_v55 }
 0x270   : > { %519 = sbr.rel (%p676_p4) target bundleno = 692 (0x2b4), region = 72 }
 0x273   : > { %v508_v56 = vpop.f32.mrb[0].mxu0 }
 0x274   : > { %515 = vst [vmem:[%s514_s13] sm:$0xff] %v508_v56  ;;  %v707_v57 = vpop.f32.mrb[1].mxu0 }
 0x275   : > { %v511_v58 = vpop.f32.mrb[2].mxu0 }
 0x276   : > { %v708_v59 = vpop.f32.mrb[3].mxu0 }
 0x27b   : > { %v520_v60 = vld [vmem:[#allocation3] sm:$0xff]  ;;  %v521_v61 = vld [vmem:[#allocation3 + $0x8] sm:$0xff] }
 0x27c   : > { %v522_v62 = vadd.f32 %v521_v61, %v520_v60 }
 0x27e   : > { %v523_v63 = vrot.slane %v522_v62, 4 }
 0x280   : > { %v524_v0 = vadd.f32 %v523_v63, %v522_v62 }
 0x282   : > { %v525_v1 = vrot.slane %v524_v0, 2 }
 0x284   : > { %v526_v2 = vadd.f32 %v525_v1, %v524_v0 }
 0x286   : > { %v527_v3 = vrot.slane %v526_v2, 1 }
 0x288   : > { %v528_v4 = vadd.f32 %v527_v3, %v526_v2 }
 0x28a   : > { %v530_v5 = vmul.f32 0.0625, %v528_v4 }
 0x28c   : > { %v531_v6 = vsub.f32 %v520_v60, %v530_v5  ;;  %v532_v7 = vsub.f32 %v521_v61, %v530_v5 }
 0x28e   : > { %v533_v8 = vmul.f32 %v531_v6, %v531_v6  ;;  %v534_v9 = vmul.f32 %v532_v7, %v532_v7 }
 0x290   : > { %v535_v10 = vadd.f32 %v534_v9, %v533_v8 }
 0x292   : > { %v536_v11 = vrot.slane %v535_v10, 4 }
 0x294   : > { %v537_v12 = vadd.f32 %v536_v11, %v535_v10 }
 0x296   : > { %v538_v13 = vrot.slane %v537_v12, 2 }
 0x298   : > { %v539_v14 = vadd.f32 %v538_v13, %v537_v12 }
 0x29a   : > { %v540_v15 = vrot.slane %v539_v14, 1 }
 0x29c   : > { %v541_v16 = vadd.f32 %v540_v15, %v539_v14 }
 0x29e   : > { %v542_v17 = vmul.f32 0.0625, %v541_v16 }
 0x2a0   : > { %v544_v18 = vadd.f32 1e-05, %v542_v17 }
 0x2a2   : > { %825 = vrsqrt.f32 %v544_v18 }
 0x2ac   : > { %v826_v20 = vpop.eup %825 }
 0x2ad   : > { %v546_v21 = vmul.f32 %v826_v20, %v543_v19 }
 0x2af   : > { %v551_v22 = vrot.slane %v546_v21, %v425_v43 }
 0x2b1   : > { %v553_v23 = vmul.f32 %v551_v22, %v531_v6  ;;  %v554_v24 = vmul.f32 %v551_v22, %v532_v7 }
 0x2b3   : > { %555 = vst [vmem:[#allocation12] sm:$0xff] %v553_v23  ;;  %556 = vst [vmem:[#allocation12 + $0x8] sm:$0xff] %v554_v24 }
 0x2b4 PF: > { %s1342_s18 = sadd.s32 4294967295, %s1013_s28   ;;  %s1025_s11 = smov [#allocation12]  }
 0x2b5   : > { %p1268_p5 = scmp.eq.s32.totalorder %s1342_s18, 3  ;;  %s563_s1 = sshll.u32 %s1025_s11, 4  ;;  %s564_s1 = int_to_ptr.vmem [resolvable:$true] %s563_s1 }
 0x2b6   : > { %s913_s9 = scalar_lea.vmem %s564_s1, 256  ;;  %p920_p0 = scmp.lt.s32.totalorder %s564_s1, %s564_s1 }
 0x2b7   : > { %p914_p7 = scmp.ne.s32.totalorder %s564_s1, %s913_s9  ;;  %p921_p3 = scmp.lt.s32.totalorder %s913_s9, %s913_s9 }
 0x2b9   : > { %p915_p10 = pnand %p914_p7, %p1268_p5  ;;  %p922_p6 = por %p921_p3, %p920_p0 }
 0x2bb   : > { %p916_p12 = pneg %p915_p10 }
 0x2bd   : > { %p923_p2 = pnand %p922_p6, %p916_p12 }
 0x2bf   : > { %926 = shalt.err (!%p923_p2)
}
 0x2c0   : > { %s927_s21 = scalar_lea.hbm %s1324_s6, 256 }
 0x2c1   : > { %p928_p13 = scmp.ne.s32.totalorder %s1324_s6, %s927_s21  ;;  %p933_p8 = scmp.lt.u32.totalorder %s927_s21, %s1324_s6 }
 0x2c3   : > { %p929_p9 = pnand %p928_p13, %p1268_p5 }
 0x2c5   : > { %p930_p11 = pneg %p929_p9 }
 0x2c7   : > { %p935_p1 = pnand %p933_p8, %p930_p11 }
 0x2c9   : > { %938 = shalt.err (!%p935_p1)
}
 0x2ca   : > { %s1026_s8 = smov 128   ;;  %s1027_s10 = smov 8  }
 0x2cb   : > { %720 = dma.vmem_to_hbm [thread:$0]  (%p1268_p5), %s564_s1, 256, %s1324_s6, [#allocation8], %s1026_s8, %s1026_s8, %s1027_s10  }
 0x2cc   : > { %980 = dma.done.wait (%p1268_p5), [#allocation8], 256  }
 0x2cd   : > { %982 = vsyncadd (%p1268_p5), [#allocation8], 4294967040 }
 0x2ce PF: > { %s21_s28 = sadd.s32 1, %s1013_s28   ;;  %s1344_s21 = smov %s989_s22 }
 0x2cf   : > { %p18_p4 = scmp.ge.s32.totalorder %s21_s28, 6   ;;  %s1345_s22 = smov %s993_s23 }
 0x2d0   : > { %s1346_s23 = smov %s1209_s17  ;;  %s1347_s24 = smov %s1005_s26 }
 0x2d1   : > { %s1348_s25 = smov %s1009_s27  ;;  %s1349_s26 = smov %s1352_s15 }
 0x2d2   : > { %s1350_s27 = smov %s1356_s16  ;;  %20 = sbr.rel (!%p18_p4) target bundleno = 10 (0xa), region = 108 }
 0x2d9   :  { %579 = vsyncpa [#allocation7], 1 }
 0x2da   :  { %581 = vsyncpa [#allocation7 + $0x1], 1 }
 0x2db   :  { %582 = vsyncpa [#allocation10], 1 }
 0x2dc   :  { %583 = vsyncpa [#allocation8], 1 }
 0x2dd   :  { %585 = vsyncpa [#allocation8 + $0x1], 1 }

</bundles_post_ra>
